<compile_context>
chip_gen: v7x
topology: tpu7x:2x2x1
jax: 0.10.0
libtpu: 0.0.40
codegen_flags: <defaults>
</compile_context>

<pallas_src>
import functools

import jax
import jax.numpy as jnp
from jax.experimental import pallas as pl
from jax.experimental.pallas import tpu as pltpu


_FOURTH_ROOT_2 = float(2.0 ** 0.25)          # c, so that c**4 == 2
_LANE_WIDTHS = (4096, 2048, 1024, 512, 256, 128)


def _poly_gf_kernel(m_ref, inv2_ref, x_ref, o_ref, *, compute_dtype):
    """out = max(0, c - (x - m)^2 * inv2)^4 - 1  with c = 2^(1/4),
    inv2 = c / (9 s^2); identical to max(0, 1-(x-m)^2/(9 s^2))^4 * 2 - 1."""
    # Subtraction in f32 keeps accuracy near x ~= m even on the bf16 path.
    d = x_ref[...].astype(jnp.float32) - m_ref[0]
    d = d.astype(compute_dtype)
    inv2 = inv2_ref[0].astype(compute_dtype)
    c = jnp.asarray(_FOURTH_ROOT_2, compute_dtype)
    zero = jnp.asarray(0.0, compute_dtype)
    one = jnp.asarray(1.0, compute_dtype)
    t = jnp.maximum(c - d * d * inv2, zero)
    t2 = t * t
    o_ref[...] = (t2 * t2 - one).astype(o_ref.dtype)


def _poly_gf_jnp(x, m, s):
    """Pure-JAX reference / fallback (f32 compute, cast back)."""
    xf = x.astype(jnp.float32)
    m = jnp.asarray(m, jnp.float32)
    s = jnp.asarray(s, jnp.float32)
    t = jnp.maximum(0.0, 1.0 - (xf - m) ** 2 / (9.0 * s ** 2))
    return ((t * t) * (t * t) * 2.0 - 1.0).astype(x.dtype)


def _native_bf16_ok():
    """bf16 VALU exists on v6e / v7x; be conservative anywhere else."""
    try:
        kind = jax.devices()[0].device_kind.lower()
    except Exception:
        return False
    return ("v6" in kind) or ("v7" in kind) or ("7x" in kind)


def _pallas_apply(x2d, m_arr, inv2_arr, *, block_rows, compute_dtype):
    rows, width = x2d.shape
    grid = (pl.cdiv(rows, block_rows),)
    n_total = rows * width
    itemsize = jnp.dtype(x2d.dtype).itemsize
    kernel = functools.partial(_poly_gf_kernel, compute_dtype=compute_dtype)
    return pl.pallas_call(
        kernel,
        out_shape=jax.ShapeDtypeStruct((rows, width), x2d.dtype),
        grid_spec=pltpu.PrefetchScalarGridSpec(
            num_scalar_prefetch=0,
            grid=grid,
            in_specs=[
                pl.BlockSpec(memory_space=pltpu.SMEM),   # m (f32 scalar)
                pl.BlockSpec(memory_space=pltpu.SMEM),   # inv2 = 2^0.25/(9 s^2)
                pl.BlockSpec((block_rows, width), lambda i: (i, 0)),
            ],
            out_specs=pl.BlockSpec((block_rows, width), lambda i: (i, 0)),
        ),
        compiler_params=pltpu.CompilerParams(
            dimension_semantics=("parallel",),
            vmem_limit_bytes=32 << 20,
        ),
        cost_estimate=pl.CostEstimate(
            flops=10 * n_total,
            bytes_accessed=2 * n_total * itemsize,
            transcendentals=0,
        ),
    )(m_arr, inv2_arr, x2d)


def polynomial_gf(x, m, s, *, target_block_bytes=4 << 20):
    """Apply the polynomial growth function elementwise to x (any shape)."""
    orig_shape = x.shape
    dtype = x.dtype
    itemsize = jnp.dtype(dtype).itemsize

    xf = x.reshape(-1)
    n = xf.shape[0]
    if n == 0:
        return x

    m_arr = jnp.asarray(m, dtype=jnp.float32).reshape(1)
    s_f32 = jnp.asarray(s, dtype=jnp.float32)
    inv2_arr = (_FOURTH_ROOT_2 / (9.0 * s_f32 * s_f32)).reshape(1)

    compute_dtype = jnp.float32
    if dtype == jnp.bfloat16 and _native_bf16_ok():
        compute_dtype = jnp.bfloat16          # native bf16 VALU on v6e/v7x

    # Lane-dense 2D view: last dim = largest multiple of 128 dividing n.
    width = next((w for w in _LANE_WIDTHS if n % w == 0), None)
    if width is None:
        # Ragged flat size (e.g. show()'s 50-point linspace).
        if n * itemsize <= (4 << 20):
            # Single full-extent block (block shape == array dims is legal);
            # no pad copy, no output slice.
            out = _pallas_apply(xf.reshape(1, n), m_arr, inv2_arr,
                                block_rows=1, compute_dtype=compute_dtype)
            return out.reshape(orig_shape)
        # Huge ragged arrays: a pad+slice round-trip would cost an extra HBM
        # pass; a fused elementwise jnp expression is already at the roofline.
        return _poly_gf_jnp(x, m, s)

    rows = n // width
    x2d = xf.reshape(rows, width)

    # ~4 MiB per input block; rows per block a multiple of 8 (or the full
    # row count when the array is small, which is always a legal block).
    target_rows = max(8, (target_block_bytes // (width * itemsize)) // 8 * 8)
    block_rows = min(rows, target_rows)
    if rows >= 16:
        # Guarantee >= 2 grid steps so both v7x TensorCores stream HBM.
        half = (((rows + 1) // 2) + 7) // 8 * 8
        block_rows = max(8, min(block_rows, half))

    out2d = _pallas_apply(x2d, m_arr, inv2_arr, block_rows=block_rows,
                          compute_dtype=compute_dtype)
    return out2d.reshape(orig_shape)


if __name__ == "__main__":
    key = jax.random.PRNGKey(0)
    # Deterministic parameter initialization (nn.Parameter m, s — scalars).
    m = jnp.float32(0.15)
    s = jnp.float32(0.015)

    # 1) NCHW f32 input consistent with the module's typical use.
    B, C, H, W = 2, 4, 16, 16
    x = jax.random.uniform(key, (B, C, H, W), dtype=jnp.float32)
    out = jax.block_until_ready(polynomial_gf(x, m, s))
    ref = _poly_gf_jnp(x, m, s)
    assert out.shape == x.shape and out.dtype == x.dtype
    assert jnp.allclose(out, ref, atol=1e-5, rtol=1e-5)

    # 2) bf16 input stays bf16 in HBM (half the traffic); native bf16 compute
    #    on v6e/v7x.  ~10 bf16 ULP at |out|~1 covers both compute paths.
    x_bf16 = x.astype(jnp.bfloat16)
    out_bf16 = jax.block_until_ready(polynomial_gf(x_bf16, m, s))
    ref_bf16 = _poly_gf_jnp(x_bf16, m, s)
    assert out_bf16.dtype == jnp.bfloat16
    assert jnp.allclose(out_bf16.astype(jnp.float32),
                        ref_bf16.astype(jnp.float32), atol=4e-2)

    # 3) Larger input: multi-block grid (>= 2 steps -> both TCs on v7x).
    x_big = jax.random.uniform(jax.random.PRNGKey(1), (4, 16, 128, 128),
                               dtype=jnp.float32)
    out_big = jax.block_until_ready(polynomial_gf(x_big, m, s))
    assert jnp.allclose(out_big, _poly_gf_jnp(x_big, m, s),
                        atol=1e-5, rtol=1e-5)

    # 4) Ragged 1D input (like show()'s linspace) -> full-extent block, no pad.
    x_rag = jnp.linspace(0.0, 1.0, 50, dtype=jnp.float32)
    out_rag = jax.block_until_ready(polynomial_gf(x_rag, m, s))
    assert out_rag.shape == x_rag.shape
    assert jnp.allclose(out_rag, _poly_gf_jnp(x_rag, m, s),
                        atol=1e-5, rtol=1e-5)

    print("KERNEL_OK")
</pallas_src>

<mosaic_0001>
module attributes {stable_mosaic.version = 11 : i64} {
  func.func @_poly_gf_kernel(%arg0: i32, %arg1: memref<1xf32, #tpu.memory_space<smem>>, %arg2: memref<1xf32, #tpu.memory_space<smem>>, %arg3: memref<1x2048xf32, #tpu.memory_space<vmem>>, %arg4: memref<1x2048xf32, #tpu.memory_space<vmem>>) attributes {dimension_semantics = [#tpu.dimension_semantics<parallel>], iteration_bounds = array<i64: 1>, scalar_prefetch = 0 : i64, scratch_operands = 0 : i64, tpu.core_type = #tpu.core_type<tc>, window_params = [{transform_indices = @transform_0, window_bounds = array<i64: 1>}, {transform_indices = @transform_1, window_bounds = array<i64: 1>}, {transform_indices = @transform_2, window_bounds = array<i64: 1, 2048>}, {transform_indices = @transform_3, window_bounds = array<i64: 1, 2048>}]} {
    %c0 = arith.constant 0 : index
    %c0_0 = arith.constant 0 : index
    %0 = vector.load %arg3[%c0, %c0_0] : memref<1x2048xf32, #tpu.memory_space<vmem>>, vector<1x2048xf32>
    %c0_1 = arith.constant 0 : index
    %1 = memref.load %arg1[%c0_1] : memref<1xf32, #tpu.memory_space<smem>>
    %2 = vector.broadcast %1 : f32 to vector<1x2048xf32>
    %3 = arith.subf %0, %2 : vector<1x2048xf32>
    %c0_2 = arith.constant 0 : index
    %4 = memref.load %arg2[%c0_2] : memref<1xf32, #tpu.memory_space<smem>>
    %5 = arith.mulf %3, %3 : vector<1x2048xf32>
    %6 = vector.broadcast %4 : f32 to vector<1x2048xf32>
    %7 = arith.mulf %5, %6 : vector<1x2048xf32>
    %cst = arith.constant 1.18920708 : f32
    %8 = vector.broadcast %cst : f32 to vector<1x2048xf32>
    %9 = arith.subf %8, %7 : vector<1x2048xf32>
    %cst_3 = arith.constant 0.000000e+00 : f32
    %10 = vector.broadcast %cst_3 : f32 to vector<1x2048xf32>
    %11 = arith.maximumf %9, %10 : vector<1x2048xf32>
    %12 = arith.mulf %11, %11 : vector<1x2048xf32>
    %13 = arith.mulf %12, %12 : vector<1x2048xf32>
    %cst_4 = arith.constant 1.000000e+00 : f32
    %14 = vector.broadcast %cst_4 : f32 to vector<1x2048xf32>
    %15 = arith.subf %13, %14 : vector<1x2048xf32>
    %c0_5 = arith.constant 0 : index
    %c0_6 = arith.constant 0 : index
    %16 = vector.load %arg4[%c0_5, %c0_6] : memref<1x2048xf32, #tpu.memory_space<vmem>>, vector<1x2048xf32>
    tpu.vector_store %arg4[%c0_5, %c0_6], %15 {strides = array<i32>} : memref<1x2048xf32, #tpu.memory_space<vmem>>, vector<1x2048xf32>,
    return
  }
  func.func @transform_0(%arg0: i32) -> i32 {
    %c0_i32 = arith.constant 0 : i32
    %c0_i32_0 = arith.constant 0 : i32
    return %c0_i32 : i32
  }
  func.func @transform_1(%arg0: i32) -> i32 {
    %c0_i32 = arith.constant 0 : i32
    %c0_i32_0 = arith.constant 0 : i32
    return %c0_i32 : i32
  }
  func.func @transform_2(%arg0: i32) -> (i32, i32) {
    %c0_i32 = arith.constant 0 : i32
    %c0_i32_0 = arith.constant 0 : i32
    return %arg0, %c0_i32 : i32, i32
  }
  func.func @transform_3(%arg0: i32) -> (i32, i32) {
    %c0_i32 = arith.constant 0 : i32
    %c0_i32_0 = arith.constant 0 : i32
    return %arg0, %c0_i32 : i32, i32
  }
}

</mosaic_0001>

<bundles_post_ra>
// kernel: tpu_custom_call.1
= control target key start
LH: loop header
LB: loop body
LE: loop exit
PB: predicated region body
PF: predicated region fallthrough
CT: control target
= control target key end

     0   :  { %10 = vsyncpa [#allocation5], 0  ;;  %s172_s0 = inlined_call_operand.<no memory space> [shape: f32[1], index: 0, kind: input, shape index: {}]   ;;  %s173_s1 = inlined_call_operand.<no memory space> [shape: f32[1], index: 1, kind: input, shape index: {}]   ;;  %s174_s2 = inlined_call_operand.hbm [shape: f32[1,2048], index: 2, kind: input, shape index: {}]   ;;  %s175_s3 = inlined_call_operand.hbm [shape: f32[1,2048], index: 3, kind: output, shape index: {}]  }
   0x1   :  { %11 = vsyncpa [#allocation6], 0  ;;  %s120_s12 = smov [#allocation4]   ;;  %s72_s16 = scalar_lea.hbm %s174_s2, 256 }
   0x2   :  { %s22_s13 = sshll.u32 %s120_s12, 4  ;;  %p73_p0 = scmp.ne.s32.totalorder %s174_s2, %s72_s16  ;;  %s23_s13 = int_to_ptr.vmem [resolvable:$true] %s22_s13 }
   0x3   :  { %p76_p1 = scmp.lt.u32.totalorder %s72_s16, %s174_s2 }
   0x5   :  { %p78_p2 = pnand %p76_p1, %p73_p0 }
   0x7   :  { %81 = shalt.err (!%p78_p2)
}
   0x8   :  { %s82_s21 = scalar_lea.vmem %s23_s13, 256  ;;  %p87_p4 = scmp.lt.s32.totalorder %s23_s13, %s23_s13 }
   0x9   :  { %p83_p3 = scmp.ne.s32.totalorder %s23_s13, %s82_s21  ;;  %p88_p5 = scmp.lt.s32.totalorder %s82_s21, %s82_s21 }
   0xb   :  { %p89_p6 = por %p88_p5, %p87_p4 }
   0xd   :  { %p90_p7 = pnand %p89_p6, %p83_p3 }
   0xf   :  { %93 = shalt.err (!%p90_p7)
}
  0x10   :  { %25 = dma.hbm_to_vmem [thread:$0]  %s174_s2, 256, %s23_s13, [#allocation5]  }
  0x11   :  { %116 = dma.done.wait [#allocation5], 256  }
  0x12   :  { %117 = vsyncadd [#allocation5], 4294967040  ;;  %v32_v0 = vstv %s172_s0  ;;  %v29_v1 = vld [vmem:[#allocation4] sm:$0xff]  ;;  %v30_v2 = vld [vmem:[#allocation4 + $0x8] sm:$0xff]  ;;  %v38_v5 = vstv %s173_s1  ;;  %s121_s2 = smov [#allocation7]  }
  0x13   :  { %v33_v3 = vsub.f32 %v29_v1, %v32_v0  ;;  %v34_v4 = vsub.f32 %v30_v2, %v32_v0  ;;  %s59_s0 = sshll.u32 %s121_s2, 4  ;;  %s60_s0 = int_to_ptr.vmem [resolvable:$true] %s59_s0 }
  0x14   :  { %s94_s1 = scalar_lea.vmem %s60_s0, 256  ;;  %p99_p9 = scmp.lt.s32.totalorder %s60_s0, %s60_s0 }
  0x15   :  { %v36_v6 = vmul.f32 %v33_v3, %v33_v3  ;;  %v37_v7 = vmul.f32 %v34_v4, %v34_v4  ;;  %p95_p8 = scmp.ne.s32.totalorder %s60_s0, %s94_s1  ;;  %p100_p10 = scmp.lt.s32.totalorder %s94_s1, %s94_s1 }
  0x17   :  { %v39_v8 = vmul.f32 %v38_v5, %v36_v6  ;;  %v40_v9 = vmul.f32 %v38_v5, %v37_v7  ;;  %p101_p11 = por %p100_p10, %p99_p9 }
  0x19   :  { %v41_v10 = vsub.f32 1.1892071, %v39_v8  ;;  %v42_v11 = vsub.f32 1.1892071, %v40_v9  ;;  %p102_p12 = pnand %p101_p11, %p95_p8 }
  0x1b   :  { %v43_v12 = vmax.f32 %v41_v10, 0.0  ;;  %v44_v13 = vmax.f32 %v42_v11, 0.0 }
  0x1d   :  { %v45_v14 = vmul.f32 %v43_v12, %v43_v12  ;;  %v46_v15 = vmul.f32 %v44_v13, %v44_v13 }
  0x1f   :  { %v47_v16 = vmul.f32 %v45_v14, %v45_v14  ;;  %v48_v17 = vmul.f32 %v46_v15, %v46_v15 }
  0x21   :  { %v68_v18 = vadd.f32 -1.0, %v47_v16  ;;  %v69_v19 = vadd.f32 -1.0, %v48_v17 }
  0x23   :  { %51 = vst [vmem:[#allocation7] sm:$0xff] %v68_v18  ;;  %52 = vst [vmem:[#allocation7 + $0x8] sm:$0xff] %v69_v19 }
  0x24   :  { %105 = shalt.err (!%p102_p12)
}
  0x25   :  { %s106_s30 = scalar_lea.hbm %s175_s3, 256 }
  0x26   :  { %p107_p13 = scmp.ne.s32.totalorder %s175_s3, %s106_s30  ;;  %p110_p0 = scmp.lt.u32.totalorder %s106_s30, %s175_s3 }
  0x28   :  { %p112_p1 = pnand %p110_p0, %p107_p13 }
  0x2a   :  { %115 = shalt.err (!%p112_p1)
}
  0x2b   :  { %62 = dma.vmem_to_hbm [thread:$0]  %s60_s0, 256, %s175_s3, [#allocation6]  }
  0x2c   :  { %118 = dma.done.wait [#allocation6], 256  }
  0x2d   :  { %119 = vsyncadd [#allocation6], 4294967040 }
  0x2e   :  { %66 = vsyncpa [#allocation5], 1 }
  0x2f   :  { %67 = vsyncpa [#allocation6], 1 }

</bundles_post_ra>
